<compile_context>
chip_gen: v5e
topology: v5e:2x2
jax: 0.10.0
libtpu: 0.0.40
codegen_flags: <defaults>
</compile_context>

<pallas_src>
import jax
import jax.numpy as jnp
from jax.experimental import pallas as pl
from jax.experimental.pallas import tpu as pltpu

LANES = 128


def _auxnet_matmul_kernel(x_ref, wt_ref, o_ref):
    """bf16-weight path: one MXU matmul per (tm, N_pad) output tile."""
    x = x_ref[...].astype(jnp.bfloat16)        # no-op if producer emits bf16
    w = wt_ref[...].astype(jnp.bfloat16)
    o_ref[...] = jnp.dot(
        x, w, preferred_element_type=jnp.float32
    ).astype(o_ref.dtype)


def _auxnet_matmul_scaled_kernel(x_ref, wq_ref, scale_ref, o_ref):
    """Quantized-weight path (int8 on v5e/v6e, fp8 on v7x).

    The quantized weight values are exactly representable in bf16, so we do a
    bf16 x bf16 MXU matmul (f32 accumulate) and fold the per-output-column
    dequant scale into the epilogue.
    """
    x = x_ref[...].astype(jnp.bfloat16)
    w = wq_ref[...].astype(jnp.bfloat16)
    acc = jnp.dot(x, w, preferred_element_type=jnp.float32)
    o_ref[...] = (acc * scale_ref[...]).astype(o_ref.dtype)   # (1, N_pad) bcast


def prepare_auxnet_weight(w, dims, *, mode="bf16"):
    """One-time weight prep (parameter-init time, NOT per forward call).

    w: (sum(dims), 1024) float32 -- PyTorch Linear weight layout (out, in).
    mode:
      "bf16" -- default / highest precision storage.
      "int8" -- per-output-column symmetric int8 (recommended on v5e/v6e).
      "fp8"  -- per-output-column scaled float8_e4m3 (recommended on v7x;
                v7x's MXU has no integer path, so do NOT ship int8 there).

    Returns (w_t_padded, scale_or_None):
      w_t_padded: (1024, N_pad) in the storage dtype, N_pad = round_up(N, 128).
      scale:      (1, N_pad) float32 per-column dequant scale, or None for bf16.
    """
    N, K = w.shape
    assert sum(dims) == N
    n_pad = (-N) % LANES
    wt = jnp.pad(jnp.asarray(w, jnp.float32), ((0, n_pad), (0, 0))).T  # (K, N_pad)

    if mode == "bf16":
        return wt.astype(jnp.bfloat16), None

    col_max = jnp.max(jnp.abs(wt), axis=0)                              # (N_pad,)
    if mode == "int8":
        scale = jnp.where(col_max > 0, col_max / 127.0, 1.0)
        wq = jnp.clip(jnp.round(wt / scale), -127, 127).astype(jnp.int8)
    elif mode == "fp8":
        scale = jnp.where(col_max > 0, col_max / 448.0, 1.0)            # e4m3 max
        wq = (wt / scale).astype(jnp.float8_e4m3fn)
    else:
        raise ValueError(f"unknown mode {mode!r}")
    return wq, scale.reshape(1, -1).astype(jnp.float32)


def _pick_tm(batch):
    """Rows per grid step: whole batch when small, <=1024-row tiles otherwise."""
    if batch <= 1024:
        return batch                       # full-extent block is always legal
    for tm in (1024, 512, 256, 128, 64, 32, 16, 8):
        if batch % tm == 0:
            return tm
    return batch                           # ragged fallback: single block


def auxnet_forward(x, w_t_padded, dims, scale=None):
    """x: (B, 1024), w_t_padded/scale from prepare_auxnet_weight.

    Returns tuple of float32 arrays split along the last dim with sizes `dims`
    (== PyTorch `self.net(x).split(self.dims, dim=-1)`).
    """
    B, K = x.shape
    K_w, N_pad = w_t_padded.shape
    assert K_w == K and N_pad % LANES == 0
    N = sum(dims)
    assert N <= N_pad

    tm = _pick_tm(B)
    gm = pl.cdiv(B, tm)

    in_specs = [
        pl.BlockSpec((tm, K), lambda i: (i, 0)),        # x tile per grid step
        pl.BlockSpec((K, N_pad), lambda i: (0, 0)),     # weight resident in VMEM
    ]
    args = (x, w_t_padded)
    kernel = _auxnet_matmul_kernel
    bytes_accessed = (
        x.size * x.dtype.itemsize
        + w_t_padded.size * w_t_padded.dtype.itemsize
        + B * N_pad * 4
    )
    if scale is not None:
        in_specs.append(pl.BlockSpec((1, N_pad), lambda i: (0, 0)))
        args = (x, w_t_padded, scale)
        kernel = _auxnet_matmul_scaled_kernel
        bytes_accessed += scale.size * 4

    y_pad = pl.pallas_call(
        kernel,
        out_shape=jax.ShapeDtypeStruct((B, N_pad), jnp.float32),
        grid=(gm,),
        in_specs=in_specs,
        out_specs=pl.BlockSpec((tm, N_pad), lambda i: (i, 0)),
        compiler_params=pltpu.CompilerParams(
            dimension_semantics=("parallel",),          # megacore-shard M axis
        ),
        cost_estimate=pl.CostEstimate(
            flops=2 * B * K * N_pad,
            transcendentals=0,
            bytes_accessed=bytes_accessed,
        ),
    )(*args)

    # Drop lane padding + split: cheap wrapper slices of the lane-dense slab.
    # (Large-B consumers may slice the padded slab directly; XLA fuses these.)
    outs = []
    off = 0
    for d in dims:
        outs.append(y_pad[:, off:off + d])
        off += d
    return tuple(outs)


if __name__ == "__main__":
    key = jax.random.PRNGKey(0)
    kx, kw = jax.random.split(key)

    dims = (32, 64)            # AuxNet(dims=(32, 64)) -> Linear(1024, 96, bias=False)
    B, K = 8, 1024             # in_features fixed at 1024 by the module
    N = sum(dims)

    x = jax.random.normal(kx, (B, K), dtype=jnp.float32)
    # PyTorch Linear weight shape: (out_features, in_features).
    w = jax.random.normal(kw, (N, K), dtype=jnp.float32) * 0.02

    ref = x @ w.T
    ref_splits = (ref[:, :dims[0]], ref[:, dims[0]:])

    fwd = jax.jit(auxnet_forward, static_argnames=("dims",))

    # --- bf16 weight storage (default / v-agnostic path) ---------------------
    wt_bf16, _ = prepare_auxnet_weight(w, dims, mode="bf16")
    outs = jax.block_until_ready(fwd(x, wt_bf16, dims))
    for o, r in zip(outs, ref_splits):
        assert o.shape == r.shape and o.dtype == jnp.float32
        assert jnp.allclose(o, r, atol=2e-2, rtol=2e-2)

    # --- int8 weight + per-column scale (v5e/v6e plan; halves weight HBM) ----
    # TODO(synk): on v7x switch mode="fp8" (no integer MXU path on v7x).
    wt_i8, scale_i8 = prepare_auxnet_weight(w, dims, mode="int8")
    outs_i8 = jax.block_until_ready(fwd(x, wt_i8, dims, scale=scale_i8))
    for o, r in zip(outs_i8, ref_splits):
        assert o.shape == r.shape and o.dtype == jnp.float32
        assert jnp.allclose(o, r, atol=5e-2, rtol=5e-2)

    print("KERNEL_OK")
</pallas_src>

<mosaic_0001>
module attributes {stable_mosaic.version = 11 : i64} {
  func.func @_auxnet_matmul_kernel(%arg0: i32, %arg1: memref<8x1024xf32, #tpu.memory_space<vmem>>, %arg2: memref<1024x128xbf16, #tpu.memory_space<vmem>>, %arg3: memref<8x128xf32, #tpu.memory_space<vmem>>) attributes {dimension_semantics = [#tpu.dimension_semantics<parallel>], iteration_bounds = array<i64: 1>, scalar_prefetch = 0 : i64, scratch_operands = 0 : i64, tpu.core_type = #tpu.core_type<tc>, window_params = [{transform_indices = @transform_0, window_bounds = array<i64: 8, 1024>}, {pipeline_mode = #tpu.pipeline_mode<synchronous>, transform_indices = @transform_1, window_bounds = array<i64: 1024, 128>}, {transform_indices = @transform_2, window_bounds = array<i64: 8, 128>}]} {
    %c0 = arith.constant 0 : index
    %c0_0 = arith.constant 0 : index
    %0 = vector.load %arg1[%c0, %c0_0] : memref<8x1024xf32, #tpu.memory_space<vmem>>, vector<8x1024xf32>
    %1 = arith.truncf %0 : vector<8x1024xf32> to vector<8x1024xbf16>
    %c0_1 = arith.constant 0 : index
    %c0_2 = arith.constant 0 : index
    %2 = vector.load %arg2[%c0_1, %c0_2] : memref<1024x128xbf16, #tpu.memory_space<vmem>>, vector<1024x128xbf16>
    %cst = arith.constant dense<0.000000e+00> : vector<8x128xf32>
    %3 = tpu.matmul %1, %2, %cst {dimension_numbers = #tpu.dot_dimension_numbers<[1], [0], [0], [1], [0, 0, 1, 1], [], []>} : vector<8x1024xbf16>, vector<1024x128xbf16>, vector<8x128xf32> -> vector<8x128xf32>
    %c0_3 = arith.constant 0 : index
    %c0_4 = arith.constant 0 : index
    %4 = vector.load %arg3[%c0_3, %c0_4] : memref<8x128xf32, #tpu.memory_space<vmem>>, vector<8x128xf32>
    tpu.vector_store %arg3[%c0_3, %c0_4], %3 {strides = array<i32>} : memref<8x128xf32, #tpu.memory_space<vmem>>, vector<8x128xf32>,
    return
  }
  func.func @transform_0(%arg0: i32) -> (i32, i32) {
    %c0_i32 = arith.constant 0 : i32
    %c0_i32_0 = arith.constant 0 : i32
    return %arg0, %c0_i32 : i32, i32
  }
  func.func @transform_1(%arg0: i32) -> (i32, i32) {
    %c0_i32 = arith.constant 0 : i32
    %c0_i32_0 = arith.constant 0 : i32
    %c0_i32_1 = arith.constant 0 : i32
    return %c0_i32, %c0_i32_0 : i32, i32
  }
  func.func @transform_2(%arg0: i32) -> (i32, i32) {
    %c0_i32 = arith.constant 0 : i32
    %c0_i32_0 = arith.constant 0 : i32
    return %arg0, %c0_i32 : i32, i32
  }
}

</mosaic_0001>

<bundles_post_ra>
// kernel: auxnet_forward.1
= control target key start
LH: loop header
LB: loop body
LE: loop exit
PB: predicated region body
PF: predicated region fallthrough
CT: control target
= control target key end

     0   :  { %7 = vsyncpa [#allocation3], 0  ;;  %s1084_s0 = inlined_call_operand.hbm [shape: f32[8,1024], index: 0, kind: input, shape index: {}]   ;;  %s1085_s1 = inlined_call_operand.hbm [shape: bf16[1024,128], index: 1, kind: input, shape index: {}]   ;;  %s1086_s2 = inlined_call_operand.vmem [shape: f32[8,128], index: 2, kind: output, shape index: {}]  }
   0x1   :  { %s14_s11 = sshll.u32 %s1084_s0, 4  ;;  %s15_s11 = int_to_ptr.hbm [resolvable:$true] %s14_s11 }
   0x2   :  { %8 = vsyncpa [#allocation5], 0  ;;  %s1056_s12 = smov [#allocation2]   ;;  %s24_s16 = sshll.u32 %s1085_s1, 4  ;;  %s25_s16 = int_to_ptr.hbm [resolvable:$true] %s24_s16 }
   0x3   :  { %s16_s13 = sshll.u32 %s1056_s12, 4  ;;  %s1057_s17 = smov [#allocation4]   ;;  %s17_s13 = int_to_ptr.vmem [resolvable:$true] %s16_s13 }
   0x4   :  { %19 = dma.hbm_to_vmem [thread:$0]  %s15_s11, 1024, %s17_s13, [#allocation3]  }
   0x5   :  { %s26_s18 = sshll.u32 %s1057_s17, 4  ;;  %s1058_s19 = smov 64   ;;  %s27_s18 = int_to_ptr.vmem [resolvable:$true] %s26_s18 }
   0x6   :  { %s1059_s20 = smov 4  }
   0x7   :  { %32 = dma.hbm_to_vmem [thread:$0]  %s25_s16, 8192, %s27_s18, [#allocation5], %s1058_s19, %s1058_s19, %s1059_s20  }
   0x8   :  { %1052 = dma.done.wait [#allocation3], 1024  }
   0x9   :  { %1053 = vsyncadd [#allocation3], 4294966272 }
   0xa   :  { %1054 = dma.done.wait [#allocation5], 8192  }
   0xb   :  { %1055 = vsyncadd [#allocation5], 4294959104  ;;  %v943_v0 = vld [vmem:[#allocation4 + $0x38] sm:$0xff]  ;;  %v942_v4 = vld [vmem:[#allocation4 + $0x30] sm:$0xff] }
   0xc   :  { %v951_v1 = vld [vmem:[#allocation4 + $0x78] sm:$0xff]  ;;  %569 = vmatpush.bf16.msra.mxu0 %v943_v0  ;;  %v950_v5 = vld [vmem:[#allocation4 + $0x70] sm:$0xff]  ;;  %v941_v8 = vld [vmem:[#allocation4 + $0x28] sm:$0xff] }
   0xd   :  { %v959_v2 = vld [vmem:[#allocation4 + $0xb8] sm:$0xff]  ;;  %582 = vmatpush.bf16.msra.mxu1 %v951_v1  ;;  %v958_v6 = vld [vmem:[#allocation4 + $0xb0] sm:$0xff]  ;;  %v949_v9 = vld [vmem:[#allocation4 + $0x68] sm:$0xff] }
   0xe   :  { %v967_v3 = vld [vmem:[#allocation4 + $0xf8] sm:$0xff]  ;;  %595 = vmatpush.bf16.msra.mxu2 %v959_v2  ;;  %v966_v7 = vld [vmem:[#allocation4 + $0xf0] sm:$0xff]  ;;  %v957_v10 = vld [vmem:[#allocation4 + $0xa8] sm:$0xff] }
   0xf   :  { %608 = vmatpush.bf16.msra.mxu3 %v967_v3  ;;  %v965_v11 = vld [vmem:[#allocation4 + $0xe8] sm:$0xff]  ;;  %v940_v12 = vld [vmem:[#allocation4 + $0x20] sm:$0xff]  ;;  %v939_v16 = vld [vmem:[#allocation4 + $0x18] sm:$0xff] }
  0x10   :  { %570 = vmatpush.bf16.msra.mxu0 %v942_v4  ;;  %v948_v13 = vld [vmem:[#allocation4 + $0x60] sm:$0xff]  ;;  %v947_v17 = vld [vmem:[#allocation4 + $0x58] sm:$0xff]  ;;  %v938_v20 = vld [vmem:[#allocation4 + $0x10] sm:$0xff] }
  0x11   :  { %583 = vmatpush.bf16.msra.mxu1 %v950_v5  ;;  %v956_v14 = vld [vmem:[#allocation4 + $0xa0] sm:$0xff]  ;;  %v955_v18 = vld [vmem:[#allocation4 + $0x98] sm:$0xff]  ;;  %v946_v21 = vld [vmem:[#allocation4 + $0x50] sm:$0xff] }
  0x12   :  { %596 = vmatpush.bf16.msra.mxu2 %v958_v6  ;;  %v964_v15 = vld [vmem:[#allocation4 + $0xe0] sm:$0xff]  ;;  %v963_v19 = vld [vmem:[#allocation4 + $0xd8] sm:$0xff]  ;;  %v954_v22 = vld [vmem:[#allocation4 + $0x90] sm:$0xff] }
  0x13   :  { %609 = vmatpush.bf16.msra.mxu3 %v966_v7  ;;  %v962_v23 = vld [vmem:[#allocation4 + $0xd0] sm:$0xff]  ;;  %v937_v24 = vld [vmem:[#allocation4 + $0x8] sm:$0xff]  ;;  %v936_v28 = vld [vmem:[#allocation4] sm:$0xff] }
  0x14   :  { %571 = vmatpush.bf16.msra.mxu0 %v941_v8  ;;  %v945_v25 = vld [vmem:[#allocation4 + $0x48] sm:$0xff]  ;;  %v944_v29 = vld [vmem:[#allocation4 + $0x40] sm:$0xff]  ;;  %v975_v32 = vld [vmem:[#allocation4 + $0x138] sm:$0xff] }
  0x15   :  { %584 = vmatpush.bf16.msra.mxu1 %v949_v9  ;;  %v953_v26 = vld [vmem:[#allocation4 + $0x88] sm:$0xff]  ;;  %v952_v30 = vld [vmem:[#allocation4 + $0x80] sm:$0xff]  ;;  %v43_v33 = vld [vmem:[#allocation2 + $0x10] sm:$0xff] }
  0x16   :  { %597 = vmatpush.bf16.msra.mxu2 %v957_v10  ;;  %v961_v27 = vld [vmem:[#allocation4 + $0xc8] sm:$0xff]  ;;  %v960_v31 = vld [vmem:[#allocation4 + $0xc0] sm:$0xff]  ;;  %v44_v34 = vld [vmem:[#allocation2 + $0x18] sm:$0xff]  ;;  %v51_v40 = vpack.c.bf16 %v43_v33, %v43_v33 }
  0x17   :  { %610 = vmatpush.bf16.msra.mxu3 %v965_v11  ;;  %v983_v35 = vld [vmem:[#allocation4 + $0x178] sm:$0xff]  ;;  %v41_v36 = vld [vmem:[#allocation2] sm:$0xff]  ;;  %v42_v37 = vld [vmem:[#allocation2 + $0x8] sm:$0xff]  ;;  %v52_v41 = vpack.c.bf16 %v44_v34, %v44_v34 }
  0x18   :  { %572 = vmatpush.bf16.msra.mxu0 %v940_v12  ;;  %v991_v38 = vld [vmem:[#allocation4 + $0x1b8] sm:$0xff]  ;;  %v49_v42 = vpack.c.bf16 %v41_v36, %v41_v36  ;;  %v50_v43 = vpack.c.bf16 %v42_v37, %v42_v37  ;;  %v974_v44 = vld [vmem:[#allocation4 + $0x130] sm:$0xff]  ;;  %v973_v48 = vld [vmem:[#allocation4 + $0x128] sm:$0xff] }
  0x19   :  { %585 = vmatpush.bf16.msra.mxu1 %v948_v13  ;;  %v999_v39 = vld [vmem:[#allocation4 + $0x1f8] sm:$0xff]  ;;  %v982_v45 = vld [vmem:[#allocation4 + $0x170] sm:$0xff]  ;;  %v981_v49 = vld [vmem:[#allocation4 + $0x168] sm:$0xff] }
  0x1a   :  { %598 = vmatpush.bf16.msra.mxu2 %v956_v14  ;;  %v990_v46 = vld [vmem:[#allocation4 + $0x1b0] sm:$0xff]  ;;  %v989_v50 = vld [vmem:[#allocation4 + $0x1a8] sm:$0xff]  ;;  %v972_v52 = vld [vmem:[#allocation4 + $0x120] sm:$0xff] }
  0x1b   :  { %611 = vmatpush.bf16.msra.mxu3 %v964_v15  ;;  %v998_v47 = vld [vmem:[#allocation4 + $0x1f0] sm:$0xff]  ;;  %v997_v51 = vld [vmem:[#allocation4 + $0x1e8] sm:$0xff]  ;;  %v980_v53 = vld [vmem:[#allocation4 + $0x160] sm:$0xff] }
  0x1c   :  { %573 = vmatpush.bf16.msra.mxu0 %v939_v16  ;;  %v988_v54 = vld [vmem:[#allocation4 + $0x1a0] sm:$0xff]  ;;  %v971_v56 = vld [vmem:[#allocation4 + $0x118] sm:$0xff]  ;;  %v970_v60 = vld [vmem:[#allocation4 + $0x110] sm:$0xff] }
  0x1d   :  { %586 = vmatpush.bf16.msra.mxu1 %v947_v17  ;;  %v996_v55 = vld [vmem:[#allocation4 + $0x1e0] sm:$0xff]  ;;  %v979_v57 = vld [vmem:[#allocation4 + $0x158] sm:$0xff]  ;;  %v978_v61 = vld [vmem:[#allocation4 + $0x150] sm:$0xff] }
  0x1e   :  { %599 = vmatpush.bf16.msra.mxu2 %v955_v18  ;;  %v987_v58 = vld [vmem:[#allocation4 + $0x198] sm:$0xff]  ;;  %v986_v62 = vld [vmem:[#allocation4 + $0x190] sm:$0xff]  ;;  %v969_v0 = vld [vmem:[#allocation4 + $0x108] sm:$0xff] }
  0x1f   :  { %612 = vmatpush.bf16.msra.mxu3 %v963_v19  ;;  %v995_v59 = vld [vmem:[#allocation4 + $0x1d8] sm:$0xff]  ;;  %v994_v63 = vld [vmem:[#allocation4 + $0x1d0] sm:$0xff]  ;;  %v977_v1 = vld [vmem:[#allocation4 + $0x148] sm:$0xff] }
  0x20   :  { %574 = vmatpush.bf16.msra.mxu0 %v938_v20  ;;  %v985_v2 = vld [vmem:[#allocation4 + $0x188] sm:$0xff]  ;;  %v968_v4 = vld [vmem:[#allocation4 + $0x100] sm:$0xff]  ;;  %v47_v10 = vld [vmem:[#allocation2 + $0x30] sm:$0xff] }
  0x21   :  { %587 = vmatpush.bf16.msra.mxu1 %v946_v21  ;;  %v993_v3 = vld [vmem:[#allocation4 + $0x1c8] sm:$0xff]  ;;  %v976_v5 = vld [vmem:[#allocation4 + $0x140] sm:$0xff]  ;;  %v48_v11 = vld [vmem:[#allocation2 + $0x38] sm:$0xff]  ;;  %v55_v14 = vpack.c.bf16 %v47_v10, %v47_v10 }
  0x22   :  { %600 = vmatpush.bf16.msra.mxu2 %v954_v22  ;;  %v984_v6 = vld [vmem:[#allocation4 + $0x180] sm:$0xff]  ;;  %v46_v8 = vld [vmem:[#allocation2 + $0x28] sm:$0xff]  ;;  %v56_v15 = vpack.c.bf16 %v48_v11, %v48_v11 }
  0x23   :  { %613 = vmatpush.bf16.msra.mxu3 %v962_v23  ;;  %v45_v7 = vld [vmem:[#allocation2 + $0x20] sm:$0xff]  ;;  %v54_v13 = vpack.c.bf16 %v46_v8, %v46_v8 }
  0x24   :  { %575 = vmatpush.bf16.msra.mxu0 %v937_v24  ;;  %v992_v9 = vld [vmem:[#allocation4 + $0x1c0] sm:$0xff]  ;;  %v53_v12 = vpack.c.bf16 %v45_v7, %v45_v7 }
  0x25   :  { %588 = vmatpush.bf16.msra.mxu1 %v945_v25 }
  0x26   :  { %601 = vmatpush.bf16.msra.mxu2 %v953_v26 }
  0x27   :  { %614 = vmatpush.bf16.msra.mxu3 %v961_v27 }
  0x28   :  { %576 = vmatpush.bf16.msra.mxu0 %v936_v28 }
  0x29   :  { %589 = vmatpush.bf16.msra.mxu1 %v944_v29 }
  0x2a   :  { %602 = vmatpush.bf16.msra.mxu2 %v952_v30 }
  0x2b   :  { %615 = vmatpush.bf16.msra.mxu3 %v960_v31  ;;  %577 = vmatmul.bf16.vlgmr.msra.gmra.mxu0 %v49_v42 }
  0x2c   :  { %621 = vmatpush.bf16.msrb.mxu0 %v975_v32  ;;  %590 = vmatmul.bf16.vlgmr.msra.gmra.mxu1 %v50_v43 }
  0x2d   :  { %634 = vmatpush.bf16.msrb.mxu1 %v983_v35  ;;  %603 = vmatmul.bf16.vlgmr.msra.gmra.mxu2 %v51_v40 }
  0x2e   :  { %647 = vmatpush.bf16.msrb.mxu2 %v991_v38  ;;  %616 = vmatmul.bf16.vlgmr.msra.gmra.mxu3 %v52_v41 }
  0x2f   :  { %660 = vmatpush.bf16.msrb.mxu3 %v999_v39 }
  0x30   :  { %622 = vmatpush.bf16.msrb.mxu0 %v974_v44 }
  0x31   :  { %635 = vmatpush.bf16.msrb.mxu1 %v982_v45 }
  0x32   :  { %648 = vmatpush.bf16.msrb.mxu2 %v990_v46 }
  0x33   :  { %661 = vmatpush.bf16.msrb.mxu3 %v998_v47 }
  0x34   :  { %623 = vmatpush.bf16.msrb.mxu0 %v973_v48 }
  0x35   :  { %636 = vmatpush.bf16.msrb.mxu1 %v981_v49 }
  0x36   :  { %649 = vmatpush.bf16.msrb.mxu2 %v989_v50 }
  0x37   :  { %662 = vmatpush.bf16.msrb.mxu3 %v997_v51 }
  0x38   :  { %624 = vmatpush.bf16.msrb.mxu0 %v972_v52 }
  0x39   :  { %637 = vmatpush.bf16.msrb.mxu1 %v980_v53 }
  0x3a   :  { %650 = vmatpush.bf16.msrb.mxu2 %v988_v54 }
  0x3b   :  { %663 = vmatpush.bf16.msrb.mxu3 %v996_v55 }
  0x3c   :  { %625 = vmatpush.bf16.msrb.mxu0 %v971_v56 }
  0x3d   :  { %638 = vmatpush.bf16.msrb.mxu1 %v979_v57 }
  0x3e   :  { %651 = vmatpush.bf16.msrb.mxu2 %v987_v58 }
  0x3f   :  { %664 = vmatpush.bf16.msrb.mxu3 %v995_v59 }
  0x40   :  { %626 = vmatpush.bf16.msrb.mxu0 %v970_v60 }
  0x41   :  { %639 = vmatpush.bf16.msrb.mxu1 %v978_v61 }
  0x42   :  { %652 = vmatpush.bf16.msrb.mxu2 %v986_v62 }
  0x43   :  { %665 = vmatpush.bf16.msrb.mxu3 %v994_v63 }
  0x44   :  { %627 = vmatpush.bf16.msrb.mxu0 %v969_v0 }
  0x45   :  { %640 = vmatpush.bf16.msrb.mxu1 %v977_v1 }
  0x46   :  { %653 = vmatpush.bf16.msrb.mxu2 %v985_v2 }
  0x47   :  { %666 = vmatpush.bf16.msrb.mxu3 %v993_v3 }
  0x48   :  { %628 = vmatpush.bf16.msrb.mxu0 %v968_v4 }
  0x49   :  { %641 = vmatpush.bf16.msrb.mxu1 %v976_v5 }
  0x4a   :  { %654 = vmatpush.bf16.msrb.mxu2 %v984_v6 }
  0x4b   :  { %667 = vmatpush.bf16.msrb.mxu3 %v992_v9  ;;  %629 = vmatmul.bf16.vlgmr.msrb.gmra.mxu0 %v53_v12 }
  0x4c   :  { %642 = vmatmul.bf16.vlgmr.msrb.gmra.mxu1 %v54_v13 }
  0x4d   :  { %655 = vmatmul.bf16.vlgmr.msrb.gmra.mxu2 %v55_v14 }
  0x4e   :  { %668 = vmatmul.bf16.vlgmr.msrb.gmra.mxu3 %v56_v15 }
  0xa8   :  { %v578_v16 = vpop.f32.mrf.mxu0 }
  0xa9   :  { %v591_v17 = vpop.f32.mrf.mxu1 }
  0xaa   :  { %v592_v24 = vadd.f32 %v591_v17, %v578_v16 }
  0xb0   :  { %v604_v18 = vpop.f32.mrf.mxu2  ;;  %v580_v20 = vpop.f32.mrf.mxu0 }
  0xb1   :  { %v617_v19 = vpop.f32.mrf.mxu3  ;;  %v593_v21 = vpop.f32.mrf.mxu1  ;;  %v605_v25 = vadd.f32 %v604_v18, %v592_v24 }
  0xb3   :  { %v618_v26 = vadd.f32 %v617_v19, %v605_v25 }
  0xb8   :  { %v606_v22 = vpop.f32.mrf.mxu2 }
  0xb9   :  { %v619_v23 = vpop.f32.mrf.mxu3 }
  0xc8   :  { %v630_v27 = vpop.f32.mrf.mxu0 }
  0xc9   :  { %v643_v28 = vpop.f32.mrf.mxu1  ;;  %v631_v29 = vadd.f32 %v630_v27, %v618_v26 }
  0xcb   :  { %v644_v30 = vadd.f32 %v643_v28, %v631_v29 }
  0xd0   :  { %v656_v31 = vpop.f32.mrf.mxu2  ;;  %v632_v34 = vpop.f32.mrf.mxu0 }
  0xd1   :  { %v669_v32 = vpop.f32.mrf.mxu3  ;;  %v657_v33 = vadd.f32 %v656_v31, %v644_v30  ;;  %v645_v35 = vpop.f32.mrf.mxu1 }
  0xd3   :  { %v670_v36 = vadd.f32 %v669_v32, %v657_v33 }
  0xd5   :  { %673 = vst [vmem:[%s1086_s2] sm:$0xff] %v670_v36 }
  0xd8   :  { %v658_v37 = vpop.f32.mrf.mxu2 }
  0xd9   :  { %v671_v38 = vpop.f32.mrf.mxu3 }
  0xda   :  { %678 = vsyncpa [#allocation3], 1 }
  0xdb   :  { %679 = vsyncpa [#allocation5], 1 }

</bundles_post_ra>
